<compile_context>
chip_gen: v6e
topology: v6e:2x2x1
jax: 0.10.0
libtpu: 0.0.40
codegen_flags: <defaults>
</compile_context>

<pallas_src>
import numpy as np
import jax
import jax.numpy as jnp
from jax.experimental import pallas as pl
from jax.experimental.pallas import tpu as pltpu

# ---------------------------------------------------------------- config ----
MIN_TAU = 0.1
MAX_TAU = 0.3
N_SIM_CLASSES = 3
MEMORYBANK_SIZE = 256
FEATURE_SIZE = 128
BATCH = 8

# cifar10-style super-category similarity table (the 8 classes present in the
# module's `cats` dict), built exactly like set_super_cat_sims().
CATS = {
    'airplane': ['bird', 'automobile'],
    'automobile': ['airplane', 'horse'],
    'bird': ['airplane', 'frog', 'deer', 'horse'],
    'cat': ['dog', 'deer', 'horse', 'frog'],
    'deer': ['dog', 'cat', 'bird', 'frog'],
    'dog': ['cat', 'deer', 'horse', 'frog'],
    'frog': ['deer', 'bird', 'cat'],
    'horse': ['dog', 'deer', 'cat', 'frog'],
}
CLASS_TO_IDX = {name: i for i, name in enumerate(sorted(CATS.keys()))}
NUM_CLASSES = len(CLASS_TO_IDX)


def _build_class_sim_tables():
    idx2name = {v: k for k, v in CLASS_TO_IDX.items()}
    sim_idx = np.zeros((NUM_CLASSES, NUM_CLASSES), dtype=np.int32)
    sim_val = np.zeros((NUM_CLASSES, NUM_CLASSES), dtype=np.float32)
    for idx in range(NUM_CLASSES):
        word = idx2name[idx]
        similar_cats = [word] + list(CATS[word])
        other_cats = [c for c in CLASS_TO_IDX.keys() if c not in similar_cats]
        order = similar_cats + other_cats
        sim_idx[idx] = np.array([CLASS_TO_IDX[w] for w in order], dtype=np.int32)
        vals = [1.0] + [0.75] * (len(similar_cats) - 1) + [0.0] * len(other_cats)
        sim_val[idx] = np.array(vals, dtype=np.float32)
    return sim_idx, sim_val


SIM_IDX_TAB, SIM_VAL_TAB = _build_class_sim_tables()


# ---------------------------------------------------------------- kernel ----
def contrastive_ranking_kernel(anchor_ref, pos_ref, mb_ref, mb_lab_ref,
                               sim_lab_ref, inv_tau_ref, loss_ref):
    anchor = anchor_ref[...]                     # [N, C] f32
    pos = pos_ref[...]                           # [N, C] f32
    mb = mb_ref[...]                             # [K, C] f32 (bank, untransposed)
    mb_lab = mb_lab_ref[...]                     # [1, K] int32
    sim_lab = sim_lab_ref[...]                   # [N, S] int32
    inv_tau = inv_tau_ref[...]                   # [N, S] f32 (precomputed 1/tau)

    # l_pos = einsum('nc,nc->n')  -> [N, 1]
    l_pos = jnp.sum(anchor * pos, axis=1, keepdims=True)
    # l_class_pos = einsum('nc,kc->nk') against the memory bank (MXU hot path).
    l_class_pos = jax.lax.dot_general(
        anchor, mb, dimension_numbers=(((1,), (1,)), ((), ())),
        preferred_element_type=jnp.float32)                       # [N, K]

    # Hoisted row max, shared by every rank (inv_tau > 0 so the max scales).
    # Using a max that is >= the per-rank true max keeps exp() stable and the
    # softmax ratio is invariant to the shift.
    row_max = jnp.maximum(jnp.max(l_class_pos, axis=1, keepdims=True), l_pos)  # [N,1]

    cum_mask = None                              # running OR of rank masks
    total = 0.0
    for i in range(N_SIM_CLASSES):               # static unrolled rank loop
        sim_i = sim_lab[:, i:i + 1]              # [N, 1]
        mask = (mb_lab == sim_i)                 # [N, K] bool (this rank's class)
        cum_mask = mask if i == 0 else jnp.logical_or(cum_mask, mask)

        it = inv_tau[:, i:i + 1]                 # [N, 1]
        m = row_max * it                         # [N, 1] shared max, scaled

        # One exp per rank, shared by numerator and denominator.
        e = jnp.exp(l_class_pos * it - m)        # [N, K]
        num = jnp.sum(jnp.where(mask, e, 0.0), axis=1, keepdims=True)      # positives
        if i == 0:
            num = num + jnp.exp(l_pos * it - m)  # l_pos column joins only at rank 0
        neg = jnp.sum(jnp.where(cum_mask, 0.0, e), axis=1, keepdims=True)  # surviving negs
        denom = num + neg
        sum_pos = num * pl.reciprocal(denom, approx=True)                  # [N, 1]

        # sum_pos = sum_pos[sum_pos > 1e-7]; loss = -log(sum_pos).mean() (or 0)
        valid = sum_pos > 1e-7
        cnt = jnp.sum(valid.astype(jnp.float32))
        safe_log = jnp.log(jnp.maximum(sum_pos, 1e-30))
        loss_i = jnp.where(
            cnt > 0.0,
            -jnp.sum(jnp.where(valid, safe_log, 0.0)) / jnp.maximum(cnt, 1.0),
            0.0)
        total = total + loss_i

    # ContrastiveRankingLoss: mean over the per-rank losses; scalar via SMEM.
    loss_ref[0] = total * (1.0 / N_SIM_CLASSES)


# --------------------------------------------------------------- wrapper ----
@jax.jit
def contrastive_ranking_loss(anchor, pos, labels, memorybank, memorybank_labels):
    n, c = anchor.shape
    k = memorybank.shape[0]

    # get_similar_labels() glue (threshold=0 -> keep first n_sim_classes cols)
    sim_idx_tab = jnp.asarray(SIM_IDX_TAB)
    sim_val_tab = jnp.asarray(SIM_VAL_TAB)
    sim_labels = sim_idx_tab[labels][:, :N_SIM_CLASSES].astype(jnp.int32)   # [N, S]
    class_sims = sim_val_tab[labels][:, :N_SIM_CLASSES]                     # [N, S]
    # get_dynamic_tau(), passed to the kernel as 1/tau (multiply, not divide)
    inv_taus = (1.0 / (MIN_TAU + (1.0 - class_sims) * (MAX_TAU - MIN_TAU))
                ).astype(jnp.float32)

    mb = memorybank.astype(jnp.float32)                                     # [K, C]
    mb_lab = memorybank_labels.reshape(1, k).astype(jnp.int32)              # [1, K]

    out = pl.pallas_call(
        contrastive_ranking_kernel,
        out_shape=jax.ShapeDtypeStruct((1,), jnp.float32),
        in_specs=[
            pl.BlockSpec(memory_space=pltpu.VMEM),   # anchor  [N, C]
            pl.BlockSpec(memory_space=pltpu.VMEM),   # pos     [N, C]
            pl.BlockSpec(memory_space=pltpu.VMEM),   # bank    [K, C]
            pl.BlockSpec(memory_space=pltpu.VMEM),   # bank labels [1, K]
            pl.BlockSpec(memory_space=pltpu.VMEM),   # similar labels [N, S]
            pl.BlockSpec(memory_space=pltpu.VMEM),   # 1/tau   [N, S]
        ],
        out_specs=pl.BlockSpec(memory_space=pltpu.SMEM),   # scalar loss
    )(anchor.astype(jnp.float32), pos.astype(jnp.float32), mb, mb_lab,
      sim_labels, inv_taus)
    return out[0]


# ------------------------------------------------------ numpy reference ----
def reference_loss_np(anchor, pos, labels, memorybank, memorybank_labels):
    anchor = np.asarray(anchor, np.float32)
    pos = np.asarray(pos, np.float32)
    labels = np.asarray(labels)
    mb = np.asarray(memorybank, np.float32)
    mb_lab = np.asarray(memorybank_labels)

    l_pos = np.sum(anchor * pos, axis=1, keepdims=True)
    l_class_pos = anchor @ mb.T
    l_neg = l_class_pos.copy()
    sim_labels = SIM_IDX_TAB[labels][:, :N_SIM_CLASSES]
    class_sims = SIM_VAL_TAB[labels][:, :N_SIM_CLASSES]

    losses = []
    for i in range(N_SIM_CLASSES):
        mask = mb_lab[None, :] == sim_labels[:, i:i + 1]
        l_neg[mask] = -np.inf
        l_cp = l_class_pos.copy()
        l_cp[~mask] = -np.inf
        tau = (MIN_TAU + (1.0 - class_sims[:, i]) * (MAX_TAU - MIN_TAU))[:, None]
        if i == 0:
            l_cp = np.concatenate([l_pos, l_cp], axis=1)
        logits = np.concatenate([l_cp, l_neg], axis=1) / tau
        logits = logits - logits.max(axis=1, keepdims=True)
        e = np.exp(logits)
        sm = e / e.sum(axis=1, keepdims=True)
        sum_pos = sm[:, :l_cp.shape[1]].sum(axis=1)
        sum_pos = sum_pos[sum_pos > 1e-7]
        losses.append(-np.log(sum_pos).mean() if len(sum_pos) > 0 else 0.0)
    return float(np.mean(losses))


# ------------------------------------------------------------------ main ----
if __name__ == "__main__":
    key = jax.random.PRNGKey(0)
    k1, k2, k3, k4, k5 = jax.random.split(key, 5)

    # Encoded, L2-normalized features (what backbone_q / backbone_k would emit)
    anchor = jax.random.normal(k1, (BATCH, FEATURE_SIZE), jnp.float32)
    anchor = anchor / jnp.linalg.norm(anchor, axis=1, keepdims=True)
    pos = jax.random.normal(k2, (BATCH, FEATURE_SIZE), jnp.float32)
    pos = pos / jnp.linalg.norm(pos, axis=1, keepdims=True)
    labels = jax.random.randint(k3, (BATCH,), 0, NUM_CLASSES, jnp.int32)

    # Memory bank buffers: randn rows, L2-normalized (as in __init__); labels
    # set to random classes (a populated bank) so the similarity masks are
    # non-trivial.
    memorybank = jax.random.normal(k4, (MEMORYBANK_SIZE, FEATURE_SIZE), jnp.float32)
    memorybank = memorybank / jnp.linalg.norm(memorybank, axis=1, keepdims=True)
    memorybank_labels = jax.random.randint(k5, (MEMORYBANK_SIZE,), 0, NUM_CLASSES,
                                           jnp.int32)

    loss = contrastive_ranking_loss(anchor, pos, labels, memorybank,
                                    memorybank_labels)
    loss = jax.block_until_ready(loss)

    ref = reference_loss_np(anchor, pos, labels, memorybank, memorybank_labels)
    assert np.isfinite(float(loss)), "kernel produced non-finite loss"
    assert abs(float(loss) - ref) < 2e-3 * max(1.0, abs(ref)), (float(loss), ref)
    print("KERNEL_OK")
</pallas_src>

<mosaic_0001>
module attributes {stable_mosaic.version = 11 : i64} {
  func.func @contrastive_ranking_kernel(%arg0: memref<8x128xf32, #tpu.memory_space<vmem>>, %arg1: memref<8x128xf32, #tpu.memory_space<vmem>>, %arg2: memref<256x128xf32, #tpu.memory_space<vmem>>, %arg3: memref<1x256xi32, #tpu.memory_space<vmem>>, %arg4: memref<8x3xi32, #tpu.memory_space<vmem>>, %arg5: memref<8x3xf32, #tpu.memory_space<vmem>>, %arg6: memref<1xf32, #tpu.memory_space<smem>>) attributes {dimension_semantics = [], scalar_prefetch = 0 : i64, scratch_operands = 0 : i64, tpu.core_type = #tpu.core_type<tc>} {
    %c0 = arith.constant 0 : index
    %c0_0 = arith.constant 0 : index
    %0 = vector.load %arg0[%c0, %c0_0] : memref<8x128xf32, #tpu.memory_space<vmem>>, vector<8x128xf32>
    %c0_1 = arith.constant 0 : index
    %c0_2 = arith.constant 0 : index
    %1 = vector.load %arg1[%c0_1, %c0_2] : memref<8x128xf32, #tpu.memory_space<vmem>>, vector<8x128xf32>
    %c0_3 = arith.constant 0 : index
    %c0_4 = arith.constant 0 : index
    %2 = vector.load %arg2[%c0_3, %c0_4] : memref<256x128xf32, #tpu.memory_space<vmem>>, vector<256x128xf32>
    %c0_5 = arith.constant 0 : index
    %c0_6 = arith.constant 0 : index
    %3 = vector.load %arg3[%c0_5, %c0_6] : memref<1x256xi32, #tpu.memory_space<vmem>>, vector<1x256xi32>
    %c0_7 = arith.constant 0 : index
    %c0_8 = arith.constant 0 : index
    %4 = vector.load %arg4[%c0_7, %c0_8] : memref<8x3xi32, #tpu.memory_space<vmem>>, vector<8x3xi32>
    %c0_9 = arith.constant 0 : index
    %c0_10 = arith.constant 0 : index
    %5 = vector.load %arg5[%c0_9, %c0_10] : memref<8x3xf32, #tpu.memory_space<vmem>>, vector<8x3xf32>
    %6 = arith.mulf %0, %1 : vector<8x128xf32>
    %cst = arith.constant dense<0.000000e+00> : vector<8xf32>
    %7 = vector.multi_reduction <add>, %6, %cst [1] : vector<8x128xf32> to vector<8xf32>
    %8 = vector.shape_cast %7 : vector<8xf32> to vector<8x1xf32>
    %cst_11 = arith.constant dense<0.000000e+00> : vector<8x256xf32>
    %9 = tpu.matmul %0, %2, %cst_11 {dimension_numbers = #tpu.dot_dimension_numbers<[1], [1], [0], [0], [0, 0, 1, 0], [], []>} : vector<8x128xf32>, vector<256x128xf32>, vector<8x256xf32> -> vector<8x256xf32>
    %cst_12 = arith.constant dense<0xFF800000> : vector<8xf32>
    %10 = vector.multi_reduction <maximumf>, %9, %cst_12 [1] : vector<8x256xf32> to vector<8xf32>
    %11 = vector.shape_cast %10 : vector<8xf32> to vector<8x1xf32>
    %12 = arith.maximumf %11, %8 : vector<8x1xf32>
    %13 = vector.extract_strided_slice %4 {offsets = [0, 0], sizes = [8, 1], strides = [1, 1]} : vector<8x3xi32> to vector<8x1xi32>
    %14 = vector.broadcast %3 : vector<1x256xi32> to vector<8x256xi32>
    %15 = vector.broadcast %13 : vector<8x1xi32> to vector<8x256xi32>
    %16 = arith.cmpi eq, %14, %15 : vector<8x256xi32>
    %17 = vector.extract_strided_slice %5 {offsets = [0, 0], sizes = [8, 1], strides = [1, 1]} : vector<8x3xf32> to vector<8x1xf32>
    %18 = arith.mulf %12, %17 : vector<8x1xf32>
    %19 = vector.broadcast %17 : vector<8x1xf32> to vector<8x256xf32>
    %20 = arith.mulf %9, %19 : vector<8x256xf32>
    %21 = vector.broadcast %18 : vector<8x1xf32> to vector<8x256xf32>
    %22 = arith.subf %20, %21 : vector<8x256xf32>
    %23 = math.exp %22 : vector<8x256xf32>
    %cst_13 = arith.constant 0.000000e+00 : f32
    %24 = vector.broadcast %cst_13 : f32 to vector<8x256xf32>
    %25 = arith.select %16, %23, %24 : vector<8x256xi1>, vector<8x256xf32>
    %cst_14 = arith.constant dense<0.000000e+00> : vector<8xf32>
    %26 = vector.multi_reduction <add>, %25, %cst_14 [1] : vector<8x256xf32> to vector<8xf32>
    %27 = vector.shape_cast %26 : vector<8xf32> to vector<8x1xf32>
    %28 = arith.mulf %8, %17 : vector<8x1xf32>
    %29 = arith.subf %28, %18 : vector<8x1xf32>
    %30 = math.exp %29 : vector<8x1xf32>
    %31 = arith.addf %27, %30 : vector<8x1xf32>
    %cst_15 = arith.constant 0.000000e+00 : f32
    %32 = vector.broadcast %cst_15 : f32 to vector<8x256xf32>
    %33 = arith.select %16, %32, %23 : vector<8x256xi1>, vector<8x256xf32>
    %cst_16 = arith.constant dense<0.000000e+00> : vector<8xf32>
    %34 = vector.multi_reduction <add>, %33, %cst_16 [1] : vector<8x256xf32> to vector<8xf32>
    %35 = vector.shape_cast %34 : vector<8xf32> to vector<8x1xf32>
    %36 = arith.addf %31, %35 : vector<8x1xf32>
    %37 = tpu.reciprocal %36 {approx = true} : vector<8x1xf32> -> vector<8x1xf32>
    %38 = arith.mulf %31, %37 : vector<8x1xf32>
    %cst_17 = arith.constant 1.000000e-07 : f32
    %39 = vector.broadcast %cst_17 : f32 to vector<8x1xf32>
    %40 = arith.cmpf ogt, %38, %39 : vector<8x1xf32>
    %41 = arith.extui %40 : vector<8x1xi1> to vector<8x1xi32>
    %42 = arith.sitofp %41 : vector<8x1xi32> to vector<8x1xf32>
    %43 = vector.shape_cast %42 : vector<8x1xf32> to vector<1x8x1xf32>
    %cst_18 = arith.constant dense<0.000000e+00> : vector<1xf32>
    %44 = vector.multi_reduction <add>, %43, %cst_18 [1, 2] : vector<1x8x1xf32> to vector<1xf32>
    %45 = vector.shape_cast %44 : vector<1xf32> to vector<1x1x1xf32>
    %46 = vector.extract %45[0, 0, 0] : f32 from vector<1x1x1xf32>
    %cst_19 = arith.constant 1.000000e-30 : f32
    %47 = vector.broadcast %cst_19 : f32 to vector<8x1xf32>
    %48 = arith.maximumf %38, %47 : vector<8x1xf32>
    %49 = math.log %48 : vector<8x1xf32>
    %cst_20 = arith.constant 0.000000e+00 : f32
    %50 = arith.cmpf ogt, %46, %cst_20 : f32
    %cst_21 = arith.constant 0.000000e+00 : f32
    %51 = vector.broadcast %cst_21 : f32 to vector<8x1xf32>
    %52 = arith.select %40, %49, %51 : vector<8x1xi1>, vector<8x1xf32>
    %53 = vector.shape_cast %52 : vector<8x1xf32> to vector<1x8x1xf32>
    %cst_22 = arith.constant dense<0.000000e+00> : vector<1xf32>
    %54 = vector.multi_reduction <add>, %53, %cst_22 [1, 2] : vector<1x8x1xf32> to vector<1xf32>
    %55 = vector.shape_cast %54 : vector<1xf32> to vector<1x1x1xf32>
    %56 = vector.extract %55[0, 0, 0] : f32 from vector<1x1x1xf32>
    %cst_23 = arith.constant 0.000000e+00 : f32
    %57 = arith.subf %cst_23, %56 : f32
    %cst_24 = arith.constant 1.000000e+00 : f32
    %58 = arith.maximumf %46, %cst_24 : f32
    %59 = arith.divf %57, %58 : f32
    %cst_25 = arith.constant 0.000000e+00 : f32
    %60 = arith.select %50, %59, %cst_25 : f32
    %cst_26 = arith.constant 0.000000e+00 : f32
    %61 = arith.addf %cst_26, %60 : f32
    %62 = vector.extract_strided_slice %4 {offsets = [0, 1], sizes = [8, 1], strides = [1, 1]} : vector<8x3xi32> to vector<8x1xi32>
    %63 = vector.broadcast %3 : vector<1x256xi32> to vector<8x256xi32>
    %64 = vector.broadcast %62 : vector<8x1xi32> to vector<8x256xi32>
    %65 = arith.cmpi eq, %63, %64 : vector<8x256xi32>
    %66 = arith.ori %16, %65 : vector<8x256xi1>
    %67 = vector.extract_strided_slice %5 {offsets = [0, 1], sizes = [8, 1], strides = [1, 1]} : vector<8x3xf32> to vector<8x1xf32>
    %68 = arith.mulf %12, %67 : vector<8x1xf32>
    %69 = vector.broadcast %67 : vector<8x1xf32> to vector<8x256xf32>
    %70 = arith.mulf %9, %69 : vector<8x256xf32>
    %71 = vector.broadcast %68 : vector<8x1xf32> to vector<8x256xf32>
    %72 = arith.subf %70, %71 : vector<8x256xf32>
    %73 = math.exp %72 : vector<8x256xf32>
    %cst_27 = arith.constant 0.000000e+00 : f32
    %74 = vector.broadcast %cst_27 : f32 to vector<8x256xf32>
    %75 = arith.select %65, %73, %74 : vector<8x256xi1>, vector<8x256xf32>
    %cst_28 = arith.constant dense<0.000000e+00> : vector<8xf32>
    %76 = vector.multi_reduction <add>, %75, %cst_28 [1] : vector<8x256xf32> to vector<8xf32>
    %77 = vector.shape_cast %76 : vector<8xf32> to vector<8x1xf32>
    %cst_29 = arith.constant 0.000000e+00 : f32
    %78 = vector.broadcast %cst_29 : f32 to vector<8x256xf32>
    %79 = arith.select %66, %78, %73 : vector<8x256xi1>, vector<8x256xf32>
    %cst_30 = arith.constant dense<0.000000e+00> : vector<8xf32>
    %80 = vector.multi_reduction <add>, %79, %cst_30 [1] : vector<8x256xf32> to vector<8xf32>
    %81 = vector.shape_cast %80 : vector<8xf32> to vector<8x1xf32>
    %82 = arith.addf %77, %81 : vector<8x1xf32>
    %83 = tpu.reciprocal %82 {approx = true} : vector<8x1xf32> -> vector<8x1xf32>
    %84 = arith.mulf %77, %83 : vector<8x1xf32>
    %cst_31 = arith.constant 1.000000e-07 : f32
    %85 = vector.broadcast %cst_31 : f32 to vector<8x1xf32>
    %86 = arith.cmpf ogt, %84, %85 : vector<8x1xf32>
    %87 = arith.extui %86 : vector<8x1xi1> to vector<8x1xi32>
    %88 = arith.sitofp %87 : vector<8x1xi32> to vector<8x1xf32>
    %89 = vector.shape_cast %88 : vector<8x1xf32> to vector<1x8x1xf32>
    %cst_32 = arith.constant dense<0.000000e+00> : vector<1xf32>
    %90 = vector.multi_reduction <add>, %89, %cst_32 [1, 2] : vector<1x8x1xf32> to vector<1xf32>
    %91 = vector.shape_cast %90 : vector<1xf32> to vector<1x1x1xf32>
    %92 = vector.extract %91[0, 0, 0] : f32 from vector<1x1x1xf32>
    %cst_33 = arith.constant 1.000000e-30 : f32
    %93 = vector.broadcast %cst_33 : f32 to vector<8x1xf32>
    %94 = arith.maximumf %84, %93 : vector<8x1xf32>
    %95 = math.log %94 : vector<8x1xf32>
    %cst_34 = arith.constant 0.000000e+00 : f32
    %96 = arith.cmpf ogt, %92, %cst_34 : f32
    %cst_35 = arith.constant 0.000000e+00 : f32
    %97 = vector.broadcast %cst_35 : f32 to vector<8x1xf32>
    %98 = arith.select %86, %95, %97 : vector<8x1xi1>, vector<8x1xf32>
    %99 = vector.shape_cast %98 : vector<8x1xf32> to vector<1x8x1xf32>
    %cst_36 = arith.constant dense<0.000000e+00> : vector<1xf32>
    %100 = vector.multi_reduction <add>, %99, %cst_36 [1, 2] : vector<1x8x1xf32> to vector<1xf32>
    %101 = vector.shape_cast %100 : vector<1xf32> to vector<1x1x1xf32>
    %102 = vector.extract %101[0, 0, 0] : f32 from vector<1x1x1xf32>
    %cst_37 = arith.constant 0.000000e+00 : f32
    %103 = arith.subf %cst_37, %102 : f32
    %cst_38 = arith.constant 1.000000e+00 : f32
    %104 = arith.maximumf %92, %cst_38 : f32
    %105 = arith.divf %103, %104 : f32
    %cst_39 = arith.constant 0.000000e+00 : f32
    %106 = arith.select %96, %105, %cst_39 : f32
    %107 = arith.addf %61, %106 : f32
    %108 = vector.extract_strided_slice %4 {offsets = [0, 2], sizes = [8, 1], strides = [1, 1]} : vector<8x3xi32> to vector<8x1xi32>
    %109 = vector.broadcast %3 : vector<1x256xi32> to vector<8x256xi32>
    %110 = vector.broadcast %108 : vector<8x1xi32> to vector<8x256xi32>
    %111 = arith.cmpi eq, %109, %110 : vector<8x256xi32>
    %112 = arith.ori %66, %111 : vector<8x256xi1>
    %113 = vector.extract_strided_slice %5 {offsets = [0, 2], sizes = [8, 1], strides = [1, 1]} : vector<8x3xf32> to vector<8x1xf32>
    %114 = arith.mulf %12, %113 : vector<8x1xf32>
    %115 = vector.broadcast %113 : vector<8x1xf32> to vector<8x256xf32>
    %116 = arith.mulf %9, %115 : vector<8x256xf32>
    %117 = vector.broadcast %114 : vector<8x1xf32> to vector<8x256xf32>
    %118 = arith.subf %116, %117 : vector<8x256xf32>
    %119 = math.exp %118 : vector<8x256xf32>
    %cst_40 = arith.constant 0.000000e+00 : f32
    %120 = vector.broadcast %cst_40 : f32 to vector<8x256xf32>
    %121 = arith.select %111, %119, %120 : vector<8x256xi1>, vector<8x256xf32>
    %cst_41 = arith.constant dense<0.000000e+00> : vector<8xf32>
    %122 = vector.multi_reduction <add>, %121, %cst_41 [1] : vector<8x256xf32> to vector<8xf32>
    %123 = vector.shape_cast %122 : vector<8xf32> to vector<8x1xf32>
    %cst_42 = arith.constant 0.000000e+00 : f32
    %124 = vector.broadcast %cst_42 : f32 to vector<8x256xf32>
    %125 = arith.select %112, %124, %119 : vector<8x256xi1>, vector<8x256xf32>
    %cst_43 = arith.constant dense<0.000000e+00> : vector<8xf32>
    %126 = vector.multi_reduction <add>, %125, %cst_43 [1] : vector<8x256xf32> to vector<8xf32>
    %127 = vector.shape_cast %126 : vector<8xf32> to vector<8x1xf32>
    %128 = arith.addf %123, %127 : vector<8x1xf32>
    %129 = tpu.reciprocal %128 {approx = true} : vector<8x1xf32> -> vector<8x1xf32>
    %130 = arith.mulf %123, %129 : vector<8x1xf32>
    %cst_44 = arith.constant 1.000000e-07 : f32
    %131 = vector.broadcast %cst_44 : f32 to vector<8x1xf32>
    %132 = arith.cmpf ogt, %130, %131 : vector<8x1xf32>
    %133 = arith.extui %132 : vector<8x1xi1> to vector<8x1xi32>
    %134 = arith.sitofp %133 : vector<8x1xi32> to vector<8x1xf32>
    %135 = vector.shape_cast %134 : vector<8x1xf32> to vector<1x8x1xf32>
    %cst_45 = arith.constant dense<0.000000e+00> : vector<1xf32>
    %136 = vector.multi_reduction <add>, %135, %cst_45 [1, 2] : vector<1x8x1xf32> to vector<1xf32>
    %137 = vector.shape_cast %136 : vector<1xf32> to vector<1x1x1xf32>
    %138 = vector.extract %137[0, 0, 0] : f32 from vector<1x1x1xf32>
    %cst_46 = arith.constant 1.000000e-30 : f32
    %139 = vector.broadcast %cst_46 : f32 to vector<8x1xf32>
    %140 = arith.maximumf %130, %139 : vector<8x1xf32>
    %141 = math.log %140 : vector<8x1xf32>
    %cst_47 = arith.constant 0.000000e+00 : f32
    %142 = arith.cmpf ogt, %138, %cst_47 : f32
    %cst_48 = arith.constant 0.000000e+00 : f32
    %143 = vector.broadcast %cst_48 : f32 to vector<8x1xf32>
    %144 = arith.select %132, %141, %143 : vector<8x1xi1>, vector<8x1xf32>
    %145 = vector.shape_cast %144 : vector<8x1xf32> to vector<1x8x1xf32>
    %cst_49 = arith.constant dense<0.000000e+00> : vector<1xf32>
    %146 = vector.multi_reduction <add>, %145, %cst_49 [1, 2] : vector<1x8x1xf32> to vector<1xf32>
    %147 = vector.shape_cast %146 : vector<1xf32> to vector<1x1x1xf32>
    %148 = vector.extract %147[0, 0, 0] : f32 from vector<1x1x1xf32>
    %cst_50 = arith.constant 0.000000e+00 : f32
    %149 = arith.subf %cst_50, %148 : f32
    %cst_51 = arith.constant 1.000000e+00 : f32
    %150 = arith.maximumf %138, %cst_51 : f32
    %151 = arith.divf %149, %150 : f32
    %cst_52 = arith.constant 0.000000e+00 : f32
    %152 = arith.select %142, %151, %cst_52 : f32
    %153 = arith.addf %107, %152 : f32
    %cst_53 = arith.constant 0.333333343 : f32
    %154 = arith.mulf %153, %cst_53 : f32
    %c0_54 = arith.constant 0 : index
    %155 = memref.load %arg6[%c0_54] : memref<1xf32, #tpu.memory_space<smem>>
    memref.store %154, %arg6[%c0_54] : memref<1xf32, #tpu.memory_space<smem>>
    return
  }
}

</mosaic_0001>

<bundles_post_ra>
// kernel: contrastive_ranking_loss.1
= control target key start
LH: loop header
LB: loop body
LE: loop exit
PB: predicated region body
PF: predicated region fallthrough
CT: control target
= control target key end

     0   :  { %11 = vsyncpa [#allocation3], 0  ;;  %s684_s0 = inlined_call_operand.vmem [shape: f32[8,128], index: 0, kind: input, shape index: {}]   ;;  %s685_s1 = inlined_call_operand.vmem [shape: f32[8,128], index: 1, kind: input, shape index: {}]   ;;  %s686_s2 = inlined_call_operand.hbm [shape: f32[256,128], index: 2, kind: input, shape index: {}]   ;;  %s687_s3 = inlined_call_operand.vmem [shape: s32[1,256], index: 3, kind: input, shape index: {}]   ;;  %s688_s4 = inlined_call_operand.vmem [shape: s32[8,3], index: 4, kind: input, shape index: {}]   ;;  %s689_s5 = inlined_call_operand.vmem [shape: f32[8,3], index: 5, kind: input, shape index: {}]   ;;  %s690_s6 = inlined_call_operand.hbm [shape: f32[1], index: 6, kind: output, shape index: {}]  }
   0x1   :  { %12 = vsyncpa [#allocation4], 0  ;;  %s535_s21 = smov [#allocation2]  }
   0x2   :  { %s22_s22 = sshll.u32 %s535_s21, 4  ;;  %s23_s22 = int_to_ptr.vmem [resolvable:$true] %s22_s22 }
   0x3   :  { %s511_s23 = scalar_lea.vmem %s23_s22, 4096  ;;  %p516_p1 = scmp.lt.s32.totalorder %s23_s22, %s23_s22 }
   0x4   :  { %p512_p0 = scmp.ne.s32.totalorder %s23_s22, %s511_s23  ;;  %p517_p2 = scmp.lt.s32.totalorder %s511_s23, %s511_s23 }
   0x6   :  { %p518_p3 = por %p517_p2, %p516_p1 }
   0x8   :  { %p519_p4 = pnand %p518_p3, %p512_p0 }
   0xa   :  { %522 = shalt.err (!%p519_p4)
}
   0xb   :  { %s536_s24 = smov 128   ;;  %s537_s25 = smov 8  }
   0xc   :  { %28 = dma.hbm_to_vmem [thread:$0]  %s686_s2, 4096, %s23_s22, [#allocation3], %s536_s24, %s536_s24, %s537_s25  }
   0xd   :  { %531 = dma.done.wait [#allocation3], 4096  }
   0xe   :  { %532 = vsyncadd [#allocation3], 4294963200  ;;  %v538_v0 = vmov 0   ;;  %v71_v1 = vld [vmem:[#allocation2 + $0xf8] sm:$0xff]  ;;  %v70_v3 = vld [vmem:[#allocation2 + $0xf0] sm:$0xff]  ;;  %v539_v41 = vmov 1   ;;  %v153_v50 = vlaneseq }
   0xf   :  { %465 = vset.pattern.permute.xlu1 %v538_v0  ;;  %466 = vset.pattern.permute.xlu0 %v538_v0  ;;  %v55_v2 = vld [vmem:[#allocation2 + $0x78] sm:$0xff]  ;;  %v54_v4 = vld [vmem:[#allocation2 + $0x70] sm:$0xff]  ;;  %v69_v5 = vld [vmem:[#allocation2 + $0xe8] sm:$0xff]  ;;  %v540_v42 = vmov 2   ;;  %vm206_vm6 = vcmask 7168   ;;  %s542_s9 = smov 1.0  }
  0x10   :  { %404 = vmatprep.subr.mxu0 %v71_v1  ;;  %v53_v6 = vld [vmem:[#allocation2 + $0x68] sm:$0xff]  ;;  %v68_v7 = vld [vmem:[#allocation2 + $0xe0] sm:$0xff]  ;;  %v67_v11 = vld [vmem:[#allocation2 + $0xd8] sm:$0xff]  ;;  %v154_v56 = vshrl.u32 %v153_v50, 7  ;;  %s543_s29 = smov [#allocation5]  }
  0x11   :  { %405 = vmatpush3.xpose.msra.mxu0 %v55_v2  ;;  %v38_v8 = vld [vmem:[%s684_s0] sm:$0xff]  ;;  %v51_v12 = vld [vmem:[#allocation2 + $0x58] sm:$0xff]  ;;  %v66_v13 = vld [vmem:[#allocation2 + $0xd0] sm:$0xff] }
  0x12   :  { %406 = vmatprep.subr.mxu0 %v70_v3  ;;  %v52_v9 = vld [vmem:[#allocation2 + $0x60] sm:$0xff]  ;;  %436 = vmatprep.mubr.f32.mxu0 %v38_v8  ;;  %v50_v14 = vld [vmem:[#allocation2 + $0x50] sm:$0xff]  ;;  %v65_v15 = vld [vmem:[#allocation2 + $0xc8] sm:$0xff]  ;;  %v155_v58 = vsub.s32 0, %v154_v56  ;;  %v159_v62 = vsub.s32 1, %v154_v56 }
  0x13   :  { %v588_v10 = vld [vmem:[%s689_s5] sm:$0xff]  ;;  %v49_v16 = vld [vmem:[#allocation2 + $0x48] sm:$0xff]  ;;  %v63_v19 = vld [vmem:[#allocation2 + $0xb8] sm:$0xff] }
  0x14   :  { %169 = vperm.xlu1 %465, %v588_v10   ;;  %v64_v17 = vld [vmem:[#allocation2 + $0xc0] sm:$0xff]  ;;  %v47_v20 = vld [vmem:[#allocation2 + $0x38] sm:$0xff]  ;;  %v62_v21 = vld [vmem:[#allocation2 + $0xb0] sm:$0xff] }
  0x15   :  { %407 = vmatpush3.xpose.msra.mxu0 %v54_v4  ;;  %v48_v18 = vld [vmem:[#allocation2 + $0x40] sm:$0xff]  ;;  %v46_v22 = vld [vmem:[#allocation2 + $0x30] sm:$0xff]  ;;  %v61_v23 = vld [vmem:[#allocation2 + $0xa8] sm:$0xff] }
  0x16   :  { %408 = vmatprep.subr.mxu0 %v69_v5  ;;  %v45_v24 = vld [vmem:[#allocation2 + $0x28] sm:$0xff]  ;;  %v60_v25 = vld [vmem:[#allocation2 + $0xa0] sm:$0xff]  ;;  %v59_v27 = vld [vmem:[#allocation2 + $0x98] sm:$0xff] }
  0x17   :  { %v44_v26 = vld [vmem:[#allocation2 + $0x20] sm:$0xff]  ;;  %v43_v28 = vld [vmem:[#allocation2 + $0x18] sm:$0xff]  ;;  %v58_v29 = vld [vmem:[#allocation2 + $0x90] sm:$0xff] }
  0x18   :  { %v42_v30 = vld [vmem:[#allocation2 + $0x10] sm:$0xff]  ;;  %v57_v31 = vld [vmem:[#allocation2 + $0x88] sm:$0xff]  ;;  %v56_v33 = vld [vmem:[#allocation2 + $0x80] sm:$0xff] }
  0x19   :  { %409 = vmatpush3.xpose.msra.mxu0 %v53_v6  ;;  %v41_v32 = vld [vmem:[#allocation2 + $0x8] sm:$0xff]  ;;  %v40_v34 = vld [vmem:[#allocation2] sm:$0xff] }
  0x1a   :  { %410 = vmatprep.subr.mxu0 %v68_v7  ;;  %v39_v35 = vld [vmem:[%s685_s1] sm:$0xff] }
  0x1b   :  { %v75_v36 = vmul.f32 %v39_v35, %v38_v8  ;;  %v73_v40 = vld [vmem:[%s688_s4] sm:$0xff] }
  0x1c   :  { %v72_v61 = vld [vmem:[%s687_s3] sm:$0x3] }
  0x1d   :  { %411 = vmatpush3.xpose.msra.mxu0 %v52_v9  ;;  %76 = vadd.xlane.f32.xlu0 %v75_v36  ;;  %v620_v2 = vrot.slane %v72_v61, %v155_v58  ;;  %v622_v5 = vrot.slane %v72_v61, %v159_v62 }
  0x1e   :  { %412 = vmatprep.subr.mxu0 %v67_v11 }
  0x21   :  { %413 = vmatpush3.xpose.msra.mxu0 %v51_v12 }
  0x22   :  { %414 = vmatprep.subr.mxu0 %v66_v13 }
  0x25   :  { %415 = vmatpush3.xpose.msra.mxu0 %v50_v14 }
  0x26   :  { %416 = vmatprep.subr.mxu0 %v65_v15 }
  0x29   :  { %417 = vmatpush3.xpose.msra.mxu0 %v49_v16 }
  0x2a   :  { %418 = vmatprep.subr.mxu0 %v64_v17 }
  0x2d   :  { %419 = vmatpush3.xpose.msra.mxu0 %v48_v18 }
  0x2e   :  { %420 = vmatprep.subr.mxu0 %v63_v19 }
  0x31   :  { %421 = vmatpush3.xpose.msra.mxu0 %v47_v20 }
  0x32   :  { %422 = vmatprep.subr.mxu0 %v62_v21 }
  0x35   :  { %423 = vmatpush3.xpose.msra.mxu0 %v46_v22 }
  0x36   :  { %424 = vmatprep.subr.mxu0 %v61_v23 }
  0x39   :  { %425 = vmatpush3.xpose.msra.mxu0 %v45_v24 }
  0x3a   :  { %426 = vmatprep.subr.mxu0 %v60_v25 }
  0x3d   :  { %427 = vmatpush3.xpose.msra.mxu0 %v44_v26 }
  0x3e   :  { %428 = vmatprep.subr.mxu0 %v59_v27 }
  0x41   :  { %429 = vmatpush3.xpose.msra.mxu0 %v43_v28 }
  0x42   :  { %430 = vmatprep.subr.mxu0 %v58_v29 }
  0x45   :  { %431 = vmatpush3.xpose.msra.mxu0 %v42_v30 }
  0x46   :  { %432 = vmatprep.subr.mxu0 %v57_v31 }
  0x49   :  { %433 = vmatpush3.xpose.msra.mxu0 %v41_v32 }
  0x4a   :  { %434 = vmatprep.subr.mxu0 %v56_v33 }
  0x4d   :  { %435 = vmatpush3.xpose.msra.mxu0 %v40_v34 }
  0x50   :  { %437 = vmatmul.mubr.f32.vlgmr.msra.gmra.mxu0 %v38_v8 }
  0x8f   :  { %v170_v47 = vpop.permute.xlu1 %169 }
  0xa6   :  { %v603_v43 = vpop.xlane.xlu0 %76 }
  0xa7   :  { %v190_v27 = vmul.f32 %v603_v43, %v588_v10 }
 0x110   :  { %v594_v37 = vpop.f32.mrf.mxu0 }
 0x111   :  { %v172_v49 = vmul.f32 %v170_v47, %v594_v37 }
 0x112   :  { %v596_v38 = vpop.f32.mrf.mxu0 }
 0x113   :  { %v149_v39 = vmax.f32 %v594_v37, %v596_v38  ;;  %v173_v48 = vmul.f32 %v170_v47, %v596_v38 }
 0x115   :  { %150 = vmax.xlane.f32.xlu0 %v149_v39 }
 0x12b   :  { %162 = vperm.xlu0 %466, %v73_v40  }
 0x12f   :  { %468 = vset.pattern.permute.xlu0 %v539_v41 }
 0x130   :  { %241 = vperm.xlu0 %468, %v73_v40  }
 0x134   :  { %470 = vset.pattern.permute.xlu0 %v540_v42 }
 0x19e   :  { %v151_v44 = vpop.xlane.xlu0 %150 }
 0x19f   :  { %v152_v45 = vmax.f32 %v151_v44, %v603_v43 }
 0x1a1   :  { %v607_v46 = vmul.f32 %v152_v45, %v588_v10 }
 0x1a3   :  { %326 = vperm.xlu0 %470, %v607_v46   ;;  %176 = vperm.xlu1 %465, %v607_v46   ;;  %v191_v28 = vsub.f32 %v190_v27, %v607_v46 }
 0x1a5   :  { %v192_v29 = vmul.f32 1.442695, %v191_v28 }
 0x1a6   :  { %v163_v6 = vpop.permute.xlu0 %162 }
 0x1a7   :  { %467 = vset.pattern.permute.xlu1 %v539_v41  ;;  %313 = vperm.xlu0 %470, %v73_v40   ;;  %vm164_vm0 = vcmp.eq.s32.totalorder %v620_v2, %v163_v6  ;;  %vm165_vm1 = vcmp.eq.s32.totalorder %v622_v5, %v163_v6 }
 0x1a8   :  { %248 = vperm.xlu1 %467, %v588_v10  }
 0x1ab   :  { %v242_v16 = vpop.permute.xlu0 %241 }
 0x1ac   :  { %254 = vperm.xlu1 %467, %v607_v46   ;;  %vm243_vm2 = vcmp.eq.s32.totalorder %v620_v2, %v242_v16  ;;  %vm244_vm3 = vcmp.eq.s32.totalorder %v622_v5, %v242_v16 }
 0x1ad   :  { %vm639_vm4 = vmor %vm164_vm0, %vm243_vm2 }
 0x1ae   :  { %vm645_vm5 = vmor %vm165_vm1, %vm244_vm3 }
 0x1b0   :  { %469 = vset.pattern.permute.xlu1 %v540_v42 }
 0x21e   :  { %v177_v51 = vpop.permute.xlu1 %176  ;;  %v327_v40 = vpop.permute.xlu0 %326 }
 0x21f   :  { %v179_v52 = vsub.f32 %v172_v49, %v177_v51  ;;  %v180_v53 = vsub.f32 %v173_v48, %v177_v51  ;;  %v541_v48 = vmov 0.0  }
 0x221   :  { %v181_v54 = vmul.f32 1.442695, %v179_v52  ;;  %v183_v55 = vmul.f32 1.442695, %v180_v53 }
 0x222   :  { %v314_v46 = vpop.permute.xlu0 %313 }
 0x223   :  { %471 = vpow2.f32 %v181_v54  ;;  %v249_v57 = vpop.permute.xlu1 %248  ;;  %vm315_vm8 = vcmp.eq.s32.totalorder %v620_v2, %v314_v46  ;;  %vm316_vm9 = vcmp.eq.s32.totalorder %v622_v5, %v314_v46 }
 0x224   :  { %473 = vpow2.f32 %v183_v55  ;;  %v251_v59 = vmul.f32 %v249_v57, %v594_v37  ;;  %v252_v60 = vmul.f32 %v249_v57, %v596_v38  ;;  %vm317_vm10 = vmor %vm639_vm4, %vm315_vm8 }
 0x225   :  { %vm318_vm11 = vmor %vm645_vm5, %vm316_vm9 }
 0x227   :  { %v255_v63 = vpop.permute.xlu1 %254 }
 0x228   :  { %v257_v0 = vsub.f32 %v251_v59, %v255_v63  ;;  %v258_v1 = vsub.f32 %v252_v60, %v255_v63 }
 0x22a   :  { %v259_v3 = vmul.f32 1.442695, %v257_v0  ;;  %v261_v4 = vmul.f32 1.442695, %v258_v1 }
 0x22c   :  { %475 = vpow2.f32 %v259_v3 }
 0x22d   :  { %477 = vpow2.f32 %v261_v4 }
 0x22e   :  { %479 = vpow2.f32 %v192_v29 }
 0x230   :  { %v472_v7 = vpop.eup %471 }
 0x231   :  { %v474_v8 = vpop.eup %473  ;;  %v185_v9 = vsel %vm164_vm0, %v472_v7, 0.0  ;;  %v195_v13 = vsel %vm164_vm0, 0.0, %v472_v7 }
 0x232   :  { %v186_v11 = vsel %vm165_vm1, %v474_v8, 0.0  ;;  %v196_v14 = vsel %vm165_vm1, 0.0, %v474_v8 }
 0x233   :  { %v187_v12 = vadd.f32 %v186_v11, %v185_v9  ;;  %v197_v15 = vadd.f32 %v196_v14, %v195_v13 }
 0x235   :  { %188 = vadd.xlane.f32.xlu1 %v187_v12 }
 0x239   :  { %v476_v17 = vpop.eup %475  ;;  %198 = vadd.xlane.f32.xlu1 %v197_v15 }
 0x23a   :  { %v478_v18 = vpop.eup %477  ;;  %v263_v19 = vsel %vm243_vm2, %v476_v17, 0.0  ;;  %v268_v24 = vsel %vm639_vm4, 0.0, %v476_v17 }
 0x23b   :  { %v264_v20 = vsel %vm244_vm3, %v478_v18, 0.0  ;;  %v269_v25 = vsel %vm645_vm5, 0.0, %v478_v18  ;;  %v480_v31 = vpop.eup %479 }
 0x23c   :  { %v265_v21 = vadd.f32 %v264_v20, %v263_v19  ;;  %v270_v26 = vadd.f32 %v269_v25, %v268_v24 }
 0x23e   :  { %266 = vadd.xlane.f32.xlu0 %v265_v21 }
 0x24a   :  { %320 = vperm.xlu1 %469, %v588_v10  }
 0x26e   :  { %271 = vadd.xlane.f32.xlu1 %v270_v26 }
 0x2be   :  { %v189_v30 = vpop.xlane.xlu1 %188 }
 0x2bf   :  { %v194_v32 = vadd.f32 %v480_v31, %v189_v30 }
 0x2c2   :  { %v199_v33 = vpop.xlane.xlu1 %198 }
 0x2c3   :  { %v200_v34 = vadd.f32 %v199_v33, %v194_v32 }
 0x2c5   :  { %481 = vrcp.f32 %v200_v34 }
 0x2c6   :  { %v321_v35 = vpop.permute.xlu1 %320 }
 0x2c7   :  { %v323_v36 = vmul.f32 %v321_v35, %v594_v37  ;;  %v324_v39 = vmul.f32 %v321_v35, %v596_v38  ;;  %v267_v61 = vpop.xlane.xlu0 %266 }
 0x2c9   :  { %v329_v41 = vsub.f32 %v323_v36, %v327_v40  ;;  %v330_v42 = vsub.f32 %v324_v39, %v327_v40 }
 0x2cb   :  { %v331_v44 = vmul.f32 1.442695, %v329_v41  ;;  %v333_v10 = vmul.f32 1.442695, %v330_v42 }
 0x2cd   :  { %483 = vpow2.f32 %v331_v44 }
 0x2ce   :  { %485 = vpow2.f32 %v333_v10 }
 0x2d2   :  { %v482_v43 = vpop.eup %481 }
 0x2d3   :  { %v202_v45 = vmul.f32 %v482_v43, %v194_v32 }
 0x2d5   :  { %vm203_vm7 = vcmp.gt.f32.partialorder %v202_v45, 1e-07  ;;  %v217_v47 = vmax.f32 %v202_v45, 1e-30 }
 0x2d6   :  { %v401_v49 = vsel %vm203_vm7, 1.0, %v541_v48 }
 0x2d7   :  { %v207_v37 = vsel %vm206_vm6, %v401_v49, 0.0  ;;  %487 = vlog2.f32 %v217_v47 }
 0x2d8   :  { %208 = vadd.xlane.f32.xlu0 %v207_v37 }
 0x2da   :  { %v484_v38 = vpop.eup %483 }
 0x2db   :  { %v486_v50 = vpop.eup %485  ;;  %v335_v51 = vsel %vm315_vm8, %v484_v38, 0.0  ;;  %v340_v52 = vsel %vm317_vm10, 0.0, %v484_v38 }
 0x2dc   :  { %v336_v53 = vsel %vm316_vm9, %v486_v50, 0.0  ;;  %v341_v54 = vsel %vm318_vm11, 0.0, %v486_v50 }
 0x2dd   :  { %v337_v55 = vadd.f32 %v336_v53, %v335_v51  ;;  %v342_v56 = vadd.f32 %v341_v54, %v340_v52 }
 0x2df   :  { %338 = vadd.xlane.f32.xlu0 %v337_v55  ;;  %343 = vadd.xlane.f32.xlu1 %v342_v56 }
 0x2e4   :  { %v488_v57 = vpop.eup %487 }
 0x2e5   :  { %v219_v58 = vmul.f32 0.6931472, %v488_v57 }
 0x2e7   :  { %v221_v59 = vsel %vm203_vm7, %v219_v58, 0.0 }
 0x2e8   :  { %v222_v60 = vsel %vm206_vm6, %v221_v59, 0.0 }
 0x2e9   :  { %223 = vadd.xlane.f32.xlu0 %v222_v60 }
 0x2f7   :  { %v272_v62 = vpop.xlane.xlu1 %271 }
 0x2f8   :  { %v273_v63 = vadd.f32 %v272_v62, %v267_v61 }
 0x2fa   :  { %489 = vrcp.f32 %v273_v63 }
 0x307   :  { %v490_v0 = vpop.eup %489 }
 0x308   :  { %v275_v1 = vmul.f32 %v490_v0, %v267_v61 }
 0x30a   :  { %vm276_vm12 = vcmp.gt.f32.partialorder %v275_v1, 1e-07  ;;  %v289_v2 = vmax.f32 %v275_v1, 1e-30 }
 0x30b   :  { %v402_v3 = vsel %vm276_vm12, 1.0, %v541_v48 }
 0x30c   :  { %v279_v4 = vsel %vm206_vm6, %v402_v3, 0.0  ;;  %491 = vlog2.f32 %v289_v2 }
 0x30d   :  { %280 = vadd.xlane.f32.xlu1 %v279_v4 }
 0x319   :  { %v492_v5 = vpop.eup %491 }
 0x31a   :  { %v291_v6 = vmul.f32 0.6931472, %v492_v5 }
 0x31c   :  { %v293_v7 = vsel %vm276_vm12, %v291_v6, 0.0 }
 0x31d   :  { %v294_v8 = vsel %vm206_vm6, %v293_v7, 0.0 }
 0x31e   :  { %295 = vadd.xlane.f32.xlu0 %v294_v8 }
 0x361   :  { %v209_v9 = vpop.xlane.xlu0 %208 }
 0x362   :  { %v210_v11 = vrot.slane %v209_v9, 4 }
 0x364   :  { %v211_v12 = vadd.f32 %v210_v11, %v209_v9 }
 0x366   :  { %v212_v13 = vrot.slane %v211_v12, 2 }
 0x368   :  { %v344_v14 = vpop.xlane.xlu1 %343  ;;  %v339_v15 = vpop.xlane.xlu0 %338  ;;  %v213_v16 = vadd.f32 %v212_v13, %v211_v12 }
 0x369   :  { %v345_v17 = vadd.f32 %v344_v14, %v339_v15 }
 0x36a   :  { %v214_v18 = vrot.slane %v213_v16, 1 }
 0x36b   :  { %493 = vrcp.f32 %v345_v17 }
 0x36c   :  { %v215_v19 = vadd.f32 %v214_v18, %v213_v16 }
 0x36e   :  { %438 = vpush %v215_v19 }
 0x372   :  { %v224_v20 = vpop.xlane.xlu0 %223 }
 0x373   :  { %v225_v21 = vrot.slane %v224_v20, 4 }
 0x375   :  { %v226_v22 = vadd.f32 %v225_v21, %v224_v20 }
 0x377   :  { %v227_v23 = vrot.slane %v226_v22, 2 }
 0x378   :  { %v494_v24 = vpop.eup %493 }
 0x379   :  { %v347_v25 = vmul.f32 %v494_v24, %v339_v15  ;;  %v228_v26 = vadd.f32 %v227_v23, %v226_v22 }
 0x37b   :  { %v361_v27 = vmax.f32 %v347_v25, 1e-30  ;;  %vm348_vm13 = vcmp.gt.f32.partialorder %v347_v25, 1e-07  ;;  %v229_v28 = vrot.slane %v228_v26, 1 }
 0x37c   :  { %v403_v29 = vsel %vm348_vm13, 1.0, %v541_v48 }
 0x37d   :  { %495 = vlog2.f32 %v361_v27  ;;  %v351_v30 = vsel %vm206_vm6, %v403_v29, 0.0  ;;  %v230_v31 = vadd.f32 %v229_v28, %v228_v26 }
 0x37e   :  { %352 = vadd.xlane.f32.xlu1 %v351_v30 }
 0x37f   :  { %440 = vpush %v230_v31 }
 0x38a   :  { %v496_v32 = vpop.eup %495 }
 0x38b   :  { %v363_v33 = vmul.f32 0.6931472, %v496_v32 }
 0x38d   :  { %v365_v34 = vsel %vm348_vm13, %v363_v33, 0.0 }
 0x38e   :  { %v366_v35 = vsel %vm206_vm6, %v365_v34, 0.0 }
 0x38f   :  { %367 = vadd.xlane.f32.xlu0 %v366_v35 }
 0x396   :  { %v281_v36 = vpop.xlane.xlu1 %280 }
 0x397   :  { %v282_v39 = vrot.slane %v281_v36, 4 }
 0x399   :  { %v283_v40 = vadd.f32 %v282_v39, %v281_v36 }
 0x39b   :  { %v284_v42 = vrot.slane %v283_v40, 2 }
 0x39d   :  { %v285_v10 = vadd.f32 %v284_v42, %v283_v40 }
 0x39f   :  { %s439_s3 = spop %438  ;;  %v286_v46 = vrot.slane %v285_v10, 1 }
 0x3a0   :  { %s233_s10 = smax.f32 %s542_s9, %s439_s3  ;;  %p220_p5 = scmp.gt.f32.partialorder %s439_s3, 0.0 }
 0x3a1   :  { %v234_v41 = vstv %s233_s10  ;;  %v287_v37 = vadd.f32 %v286_v46, %v285_v10 }
 0x3a2   :  { %497 = vrcp.f32 %v234_v41 }
 0x3a7   :  { %v296_v44 = vpop.xlane.xlu0 %295 }
 0x3a8   :  { %v297_v43 = vrot.slane %v296_v44, 4 }
 0x3aa   :  { %v298_v45 = vadd.f32 %v297_v43, %v296_v44 }
 0x3ac   :  { %v299_v47 = vrot.slane %v298_v45, 2 }
 0x3ae   :  { %v300_v48 = vadd.f32 %v299_v47, %v298_v45 }
 0x3af   :  { %v498_v49 = vpop.eup %497 }
 0x3b0   :  { %442 = vpush %v498_v49  ;;  %v301_v38 = vrot.slane %v300_v48, 1  ;;  %s441_s11 = spop %440 }
 0x3b1   :  { %444 = vpush %v287_v37  ;;  %s232_s12 = ssub.f32 0.0, %s441_s11 }
 0x3b2   :  { %v302_v50 = vadd.f32 %v301_v38, %v300_v48 }
 0x3b4   :  { %446 = vpush %v302_v50 }
 0x3e1   :  { %s443_s13 = spop %442 }
 0x3e2   :  { %s237_s14 = smul.f32 %s443_s13, %s232_s12  ;;  %s445_s15 = spop %444 }
 0x3e3   :  { %s305_s16 = smax.f32 %s542_s9, %s445_s15  ;;  %p292_p6 = scmp.gt.f32.partialorder %s445_s15, 0.0 }
 0x3e4   :  { %s696_s14 = smov (!%p220_p5, %s237_s14), 0.0  ;;  %v306_v51 = vstv %s305_s16 }
 0x3e5   :  { %499 = vrcp.f32 %v306_v51  ;;  %s447_s17 = spop %446 }
 0x3e6   :  { %s304_s18 = ssub.f32 0.0, %s447_s17 }
 0x3f2   :  { %v500_v52 = vpop.eup %499 }
 0x3f3   :  { %448 = vpush %v500_v52 }
 0x407   :  { %v353_v53 = vpop.xlane.xlu1 %352 }
 0x408   :  { %v354_v54 = vrot.slane %v353_v53, 4 }
 0x40a   :  { %v355_v55 = vadd.f32 %v354_v54, %v353_v53 }
 0x40c   :  { %v356_v56 = vrot.slane %v355_v55, 2 }
 0x40e   :  { %v357_v57 = vadd.f32 %v356_v56, %v355_v55 }
 0x410   :  { %v358_v58 = vrot.slane %v357_v57, 1 }
 0x412   :  { %v359_v59 = vadd.f32 %v358_v58, %v357_v57 }
 0x414   :  { %450 = vpush %v359_v59 }
 0x418   :  { %v368_v60 = vpop.xlane.xlu0 %367 }
 0x419   :  { %v369_v61 = vrot.slane %v368_v60, 4 }
 0x41b   :  { %v370_v62 = vadd.f32 %v369_v61, %v368_v60 }
 0x41d   :  { %v371_v63 = vrot.slane %v370_v62, 2 }
 0x41f   :  { %v372_v0 = vadd.f32 %v371_v63, %v370_v62 }
 0x421   :  { %v373_v1 = vrot.slane %v372_v0, 1 }
 0x423   :  { %v374_v2 = vadd.f32 %v373_v1, %v372_v0 }
 0x424   :  { %s449_s19 = spop %448 }
 0x425   :  { %s309_s20 = smul.f32 %s449_s19, %s304_s18  ;;  %452 = vpush %v374_v2 }
 0x427   :  { %s698_s20 = smov (!%p292_p6, %s309_s20), 0.0 }
 0x428   :  { %s311_s21 = sadd.f32 %s698_s20, %s696_s14 }
 0x445   :  { %s451_s22 = spop %450 }
 0x446   :  { %s377_s23 = smax.f32 %s542_s9, %s451_s22  ;;  %p364_p7 = scmp.gt.f32.partialorder %s451_s22, 0.0 }
 0x447   :  { %v378_v3 = vstv %s377_s23 }
 0x448   :  { %501 = vrcp.f32 %v378_v3 }
 0x455   :  { %v502_v4 = vpop.eup %501 }
 0x456   :  { %454 = vpush %v502_v4  ;;  %s453_s24 = spop %452 }
 0x457   :  { %s376_s25 = ssub.f32 0.0, %s453_s24 }
 0x487   :  { %s455_s26 = spop %454 }
 0x488   :  { %s381_s27 = smul.f32 %s455_s26, %s376_s25 }
 0x48a   :  { %s700_s27 = smov (!%p364_p7, %s381_s27), 0.0 }
 0x48b   :  { %s383_s28 = sadd.f32 %s700_s27, %s311_s21 }
 0x48d   :  { %s384_s2 = smul.f32 0.33333334, %s383_s28 }
 0x48f   :  { %386 = sst [smem:[#allocation5]] %s384_s2 }
 0x490   :  { %394 = dma.smem_to_hbm %s543_s29, 16, %s690_s6, [#allocation4]  }
 0x491   :  { %533 = dma.done.wait [#allocation4], 16  }
 0x492   :  { %534 = vsyncadd [#allocation4], 4294967280 }
 0x493   :  { %398 = sfence }
 0x494   :  { %399 = vsyncpa [#allocation3], 1 }
 0x495   :  { %400 = vsyncpa [#allocation4], 1 }

</bundles_post_ra>
